<compile_context>
chip_gen: v6e
topology: v6e:2x2x1
jax: 0.10.0
libtpu: 0.0.40
codegen_flags: <defaults>
</compile_context>

<pallas_src>
import functools

import jax
import jax.numpy as jnp
from jax import lax
from jax.experimental import pallas as pl
from jax.experimental.pallas import tpu as pltpu


def _round_up(v, m):
    return (v + m - 1) // m * m


# ----------------------------------------------------------------- kernels ---

def _input_proj_kernel(x_ref, w_ref, b_ref, o_ref):
    """gi = x @ W_ih_all + b_all  as one big lane-dense GEMM (per time-chunk tile)."""
    acc = jnp.dot(x_ref[...], w_ref[...], preferred_element_type=jnp.float32)
    o_ref[...] = (acc + b_ref[...]).astype(o_ref.dtype)


def _bigru_kernel(gi_ref, mask_ref, whh_ref, bhn_ref, hs_ref, h_scr):
    """One direction (grid axis 0) over one time chunk (grid axis 1).

    gi_ref  : (tT, Bp, 3Hp)  precomputed x@W_ih (+ folded biases) for this direction
    mask_ref: (tT, Bp, 1)    1.0 for real tokens, 0.0 for padding
    whh_ref : (1, Hp, 3Hp)   recurrent weights for this direction
    bhn_ref : (1, 1, Hp)     b_hn (the only recurrent bias that cannot be folded)
    hs_ref  : (tT, Bp, Hp)   this direction's half of the fused (Tp, Bp, 2Hp) output
    h_scr   : (Bp, Hp)       hidden state, persistent across time chunks
    """
    d = pl.program_id(0)              # 0 = forward, 1 = backward
    tT, Bp, _ = gi_ref.shape
    Hp = hs_ref.shape[2]

    @pl.when(pl.program_id(1) == 0)   # first chunk of this direction: reset state
    def _():
        h_scr[...] = jnp.zeros_like(h_scr)

    # Hoisted out of the serial time loop (no per-step broadcasts / reloads).
    whh = whh_ref[0]                                    # (Hp, 3Hp)
    bhn = jnp.broadcast_to(bhn_ref[0], (Bp, Hp))        # (Bp, Hp)

    def step(i, carry):
        # forward walks the chunk 0..tT-1, backward walks tT-1..0
        t = i + d * (tT - 1 - 2 * i)
        gi = gi_ref[t].astype(jnp.float32)              # (Bp, 3Hp), gates in f32
        m = mask_ref[t]                                 # (Bp, 1)
        h_prev = h_scr[...]
        gh = jnp.dot(h_prev.astype(whh.dtype), whh,
                     preferred_element_type=jnp.float32)  # (Bp, 3Hp)
        # PyTorch GRU gate order r, z, n ; Hp is a multiple of 128 -> lane-aligned
        r = jax.nn.sigmoid(gi[:, 0:Hp] + gh[:, 0:Hp])
        z = jax.nn.sigmoid(gi[:, Hp:2 * Hp] + gh[:, Hp:2 * Hp])
        n = jnp.tanh(gi[:, 2 * Hp:3 * Hp] + r * (gh[:, 2 * Hp:3 * Hp] + bhn))
        h_new = n + z * (h_prev - n)                    # == (1-z)*n + z*h_prev
        h = h_prev + m * (h_new - h_prev)               # padded steps keep h
        h_scr[...] = h
        hs_ref[t] = (m * h).astype(hs_ref.dtype)        # padded outputs are zero
        return carry

    lax.fori_loop(0, tT, step, 0)
    # TODO(synk): on 1-TC chips (v5e/v6e) the two directions run back-to-back; an
    # interleaved fwd+bwd loop body would additionally overlap MXU and VPU/EUP.


# ----------------------------------------------------------- parameter prep ---

def _pad_gate_cols(w, H, Hp):
    """(..., 3H) -> (..., 3Hp): zero-pad each of the r/z/n gate blocks to Hp."""
    lead = w.shape[:-1]
    w = w.reshape(lead + (3, H))
    w = jnp.pad(w, [(0, 0)] * len(lead) + [(0, 0), (0, Hp - H)])
    return w.reshape(lead + (3 * Hp,))


def _prep_direction(wih, whh, bih, bhh, H, Hp, mxu_dtype):
    # Fold b_ih + b_hh for the r and z gates into the input-projection bias.
    # b_hn must stay inside the n-gate: n = tanh(gi_n + r*(gh_n + b_hn)).
    b_fold = bih + jnp.concatenate(
        [bhh[:, :2 * H], jnp.zeros((1, H), bhh.dtype)], axis=1)
    wih_p = _pad_gate_cols(wih, H, Hp).astype(mxu_dtype)                 # (I, 3Hp)
    b_p = _pad_gate_cols(b_fold, H, Hp).astype(jnp.float32)              # (1, 3Hp)
    whh_p = jnp.pad(_pad_gate_cols(whh, H, Hp),
                    ((0, Hp - H), (0, 0))).astype(mxu_dtype)             # (Hp, 3Hp)
    bhn_p = jnp.pad(bhh[:, 2 * H:], ((0, 0), (0, Hp - H))).astype(jnp.float32)
    return wih_p, b_p, whh_p, bhn_p


# ------------------------------------------------------------------ forward ---

def text_encoder_forward(x, params, *, mxu_dtype=jnp.bfloat16):
    """x: (T, B) int32 token ids (0 = padding id).

    Returns (hs, mask):
      hs   : (T, B, 2H) f32 bidirectional GRU states ([forward | backward]).
      mask : (T, B) f32 padding mask (all ones when the batch has no padding;
             PyTorch returns None in that case -- see `mask_or_none`).
    Fully jittable, no host synchronisation.
    """
    emb = params["emb"]
    T, B = x.shape
    I = emb.shape[1]
    H = params["whh_f"].shape[0]

    Hp = _round_up(H, 128)            # lane-aligned gate slices and stores
    Bp = _round_up(B, 8)              # sublane-aligned batch
    gi_bytes = jnp.dtype(mxu_dtype).itemsize
    # time chunk so the streamed gi tile stays <= ~2 MiB (Pallas double-buffers it)
    tT = max(1, min(T, (2 * 1024 * 1024) // (Bp * 3 * Hp * gi_bytes)))
    Tp = _round_up(T, tT)
    nT = Tp // tT

    # ---- glue (XLA): pad, embed, build mask ---------------------------------
    # TODO(synk): fuse the embedding gather into the projection kernel via
    # PrefetchScalarGridSpec scalar-prefetch ids instead of materializing embs.
    xp = jnp.zeros((Tp, Bp), x.dtype).at[:T, :B].set(x)
    mask = (xp != 0).astype(jnp.float32)                       # (Tp, Bp)
    embs = jnp.take(emb, xp, axis=0).astype(mxu_dtype)         # (Tp, Bp, I)

    wih_f, b_f, whh_f, bhn_f = _prep_direction(
        params["wih_f"], params["whh_f"], params["bih_f"], params["bhh_f"],
        H, Hp, mxu_dtype)
    wih_b, b_b, whh_b, bhn_b = _prep_direction(
        params["wih_b"], params["whh_b"], params["bih_b"], params["bhh_b"],
        H, Hp, mxu_dtype)

    w_all = jnp.concatenate([wih_f, wih_b], axis=1)            # (I, 6Hp)
    b_all = jnp.concatenate([b_f, b_b], axis=1)                # (1, 6Hp) f32
    whh_all = jnp.stack([whh_f, whh_b])                        # (2, Hp, 3Hp)
    bhn_all = jnp.stack([bhn_f, bhn_b])                        # (2, 1, Hp) f32

    # ---- kernel 1: one big input-projection GEMM ----------------------------
    Mp = Tp * Bp
    tM = tT * Bp                                               # divides Mp exactly
    gi2 = pl.pallas_call(
        _input_proj_kernel,
        out_shape=jax.ShapeDtypeStruct((Mp, 6 * Hp), mxu_dtype),
        grid_spec=pltpu.PrefetchScalarGridSpec(
            num_scalar_prefetch=0,
            grid=(nT,),
            in_specs=[
                pl.BlockSpec((tM, I), lambda m: (m, 0)),
                pl.BlockSpec((I, 6 * Hp), lambda m: (0, 0)),
                pl.BlockSpec((1, 6 * Hp), lambda m: (0, 0)),
            ],
            out_specs=pl.BlockSpec((tM, 6 * Hp), lambda m: (m, 0)),
        ),
        compiler_params=pltpu.CompilerParams(
            dimension_semantics=("parallel",),
            vmem_limit_bytes=32 * 1024 * 1024),
    )(embs.reshape(Mp, I), w_all, b_all)
    gi = gi2.reshape(Tp, Bp, 6 * Hp)

    # ---- kernel 2: bidirectional gated recurrence ---------------------------
    def t_idx(d, c):      # forward visits chunks 0..nT-1, backward nT-1..0
        return c + d * (nT - 1 - 2 * c)

    hs_p = pl.pallas_call(
        _bigru_kernel,
        out_shape=jax.ShapeDtypeStruct((Tp, Bp, 2 * Hp), jnp.float32),
        grid_spec=pltpu.PrefetchScalarGridSpec(
            num_scalar_prefetch=0,
            grid=(2, nT),                       # (direction, time-chunk)
            in_specs=[
                pl.BlockSpec((tT, Bp, 3 * Hp), lambda d, c: (t_idx(d, c), 0, d)),
                pl.BlockSpec((tT, Bp, 1),      lambda d, c: (t_idx(d, c), 0, 0)),
                pl.BlockSpec((1, Hp, 3 * Hp),  lambda d, c: (d, 0, 0)),
                pl.BlockSpec((1, 1, Hp),       lambda d, c: (d, 0, 0)),
            ],
            out_specs=pl.BlockSpec((tT, Bp, Hp), lambda d, c: (t_idx(d, c), 0, d)),
            scratch_shapes=[pltpu.VMEM((Bp, Hp), jnp.float32)],
        ),
        compiler_params=pltpu.CompilerParams(
            dimension_semantics=("parallel", "arbitrary"),
            vmem_limit_bytes=32 * 1024 * 1024),
    )(gi, mask[:, :, None], whh_all, bhn_all)

    if Hp == H:
        hs = hs_p[:T, :B, :]
    else:  # only when H is not already lane-aligned (e.g. the tiny demo sizes)
        hs = jnp.concatenate([hs_p[:T, :B, :H], hs_p[:T, :B, Hp:Hp + H]], axis=-1)
    return hs, mask[:T, :B]


def mask_or_none(x, mask):
    """PyTorch parity helper: TextEncoder returns mask=None for same-length batches.
    This needs a host sync, so it is kept OUT of the jitted forward path."""
    return mask if bool(jax.device_get(jnp.any(x == 0))) else None


# ---------------------------------------------------------------- reference ---

def _gru_cell_ref(x, h, wih, whh, bih, bhh, H):
    gi = jnp.dot(x, wih) + bih
    gh = jnp.dot(h, whh) + bhh
    r = jax.nn.sigmoid(gi[:, :H] + gh[:, :H])
    z = jax.nn.sigmoid(gi[:, H:2 * H] + gh[:, H:2 * H])
    n = jnp.tanh(gi[:, 2 * H:] + r * gh[:, 2 * H:])
    return (1.0 - z) * n + z * h


def _reference_forward(x, params):
    """Pure-JAX reference (lax.scan, f32) of the same masked bidirectional GRU."""
    emb = params["emb"]
    H = params["whh_f"].shape[0]
    B = x.shape[1]
    embs = jnp.take(emb, x, axis=0).astype(jnp.float32)
    mask = (x != 0).astype(jnp.float32)[:, :, None]

    def direction(wih, whh, bih, bhh, reverse):
        def step(h, inp):
            e_t, m_t = inp
            h_new = _gru_cell_ref(e_t, h, wih, whh, bih, bhh, H)
            h = m_t * h_new + (1.0 - m_t) * h
            return h, m_t * h
        h0 = jnp.zeros((B, H), jnp.float32)
        _, outs = lax.scan(step, h0, (embs, mask), reverse=reverse)
        return outs

    hf = direction(params["wih_f"], params["whh_f"], params["bih_f"], params["bhh_f"], False)
    hb = direction(params["wih_b"], params["whh_b"], params["bih_b"], params["bhh_b"], True)
    return jnp.concatenate([hf, hb], axis=-1)


def make_params(key, n_vocab, input_size, hidden_size):
    ks = jax.random.split(key, 9)
    s = 1.0 / jnp.sqrt(hidden_size)
    emb = 0.1 * jax.random.normal(ks[0], (n_vocab, input_size), jnp.float32)
    emb = emb.at[0].set(0.0)  # padding_idx=0
    u = lambda k, shape: jax.random.uniform(k, shape, jnp.float32, -s, s)
    return {
        "emb":   emb,
        "wih_f": u(ks[1], (input_size, 3 * hidden_size)),
        "whh_f": u(ks[2], (hidden_size, 3 * hidden_size)),
        "bih_f": u(ks[3], (1, 3 * hidden_size)),
        "bhh_f": u(ks[4], (1, 3 * hidden_size)),
        "wih_b": u(ks[5], (input_size, 3 * hidden_size)),
        "whh_b": u(ks[6], (hidden_size, 3 * hidden_size)),
        "bih_b": u(ks[7], (1, 3 * hidden_size)),
        "bhh_b": u(ks[8], (1, 3 * hidden_size)),
    }


if __name__ == "__main__":
    T, B = 8, 4
    n_vocab, input_size, hidden_size = 20, 32, 32

    key = jax.random.PRNGKey(0)
    k_tok, k_par = jax.random.split(key)

    # token ids in [1, n_vocab), padded with 0 at the tail (pack_padded style)
    x = jax.random.randint(k_tok, (T, B), 1, n_vocab, dtype=jnp.int32)
    lengths = jnp.array([8, 6, 5, 3], dtype=jnp.int32)
    x = jnp.where(jnp.arange(T)[:, None] < lengths[None, :], x, 0)

    params = make_params(k_par, n_vocab, input_size, hidden_size)
    hs_ref = _reference_forward(x, params)

    fwd_f32 = jax.jit(functools.partial(text_encoder_forward, mxu_dtype=jnp.float32))
    fwd_bf16 = jax.jit(functools.partial(text_encoder_forward, mxu_dtype=jnp.bfloat16))

    # f32 MXU path: tight check vs pure-JAX reference
    hs32, mask32 = fwd_f32(x, params)
    hs32 = jax.block_until_ready(hs32)
    assert hs32.shape == (T, B, 2 * hidden_size)
    assert mask32.shape == (T, B)
    assert jnp.allclose(hs32, hs_ref, rtol=1e-3, atol=1e-3), "f32 kernel mismatch"
    assert mask_or_none(x, mask32) is not None

    # bf16 MXU-operand path (default, recommended for v6e/v7x): loose check
    hs16, mask16 = fwd_bf16(x, params)
    hs16 = jax.block_until_ready(hs16)
    assert hs16.shape == (T, B, 2 * hidden_size)
    assert jnp.allclose(hs16, hs_ref, rtol=3e-2, atol=3e-2), "bf16 kernel mismatch"

    # same-length batch -> PyTorch semantics give mask = None
    x_full = jax.random.randint(k_tok, (T, B), 1, n_vocab, dtype=jnp.int32)
    hs_full, mask_full = fwd_bf16(x_full, params)
    hs_full = jax.block_until_ready(hs_full)
    assert mask_or_none(x_full, mask_full) is None
    assert jnp.allclose(hs_full, _reference_forward(x_full, params),
                        rtol=3e-2, atol=3e-2), "same-length batch mismatch"

    print("KERNEL_OK")
</pallas_src>

<mosaic_0001>
module attributes {stable_mosaic.version = 11 : i64} {
  func.func @_input_proj_kernel(%arg0: i32, %arg1: memref<64x32xf32, #tpu.memory_space<vmem>>, %arg2: memref<32x768xf32, #tpu.memory_space<vmem>>, %arg3: memref<1x768xf32, #tpu.memory_space<vmem>>, %arg4: memref<64x768xf32, #tpu.memory_space<vmem>>) attributes {dimension_semantics = [#tpu.dimension_semantics<parallel>], iteration_bounds = array<i64: 1>, scalar_prefetch = 0 : i64, scratch_operands = 0 : i64, tpu.core_type = #tpu.core_type<tc>, window_params = [{transform_indices = @transform_0, window_bounds = array<i64: 64, 32>}, {pipeline_mode = #tpu.pipeline_mode<synchronous>, transform_indices = @transform_1, window_bounds = array<i64: 32, 768>}, {pipeline_mode = #tpu.pipeline_mode<synchronous>, transform_indices = @transform_2, window_bounds = array<i64: 1, 768>}, {transform_indices = @transform_3, window_bounds = array<i64: 64, 768>}]} {
    %c0 = arith.constant 0 : index
    %c0_0 = arith.constant 0 : index
    %0 = vector.load %arg1[%c0, %c0_0] : memref<64x32xf32, #tpu.memory_space<vmem>>, vector<64x32xf32>
    %c0_1 = arith.constant 0 : index
    %c0_2 = arith.constant 0 : index
    %1 = vector.load %arg2[%c0_1, %c0_2] : memref<32x768xf32, #tpu.memory_space<vmem>>, vector<32x768xf32>
    %cst = arith.constant dense<0.000000e+00> : vector<64x768xf32>
    %2 = tpu.matmul %0, %1, %cst {dimension_numbers = #tpu.dot_dimension_numbers<[1], [0], [0], [1], [0, 0, 1, 1], [], []>} : vector<64x32xf32>, vector<32x768xf32>, vector<64x768xf32> -> vector<64x768xf32>
    %c0_3 = arith.constant 0 : index
    %c0_4 = arith.constant 0 : index
    %3 = vector.load %arg3[%c0_3, %c0_4] : memref<1x768xf32, #tpu.memory_space<vmem>>, vector<1x768xf32>
    %4 = vector.broadcast %3 : vector<1x768xf32> to vector<64x768xf32>
    %5 = arith.addf %2, %4 : vector<64x768xf32>
    %c0_5 = arith.constant 0 : index
    %c0_6 = arith.constant 0 : index
    %6 = vector.load %arg4[%c0_5, %c0_6] : memref<64x768xf32, #tpu.memory_space<vmem>>, vector<64x768xf32>
    tpu.vector_store %arg4[%c0_5, %c0_6], %5 {strides = array<i32>} : memref<64x768xf32, #tpu.memory_space<vmem>>, vector<64x768xf32>,
    return
  }
  func.func @transform_0(%arg0: i32) -> (i32, i32) {
    %c0_i32 = arith.constant 0 : i32
    %c0_i32_0 = arith.constant 0 : i32
    return %arg0, %c0_i32 : i32, i32
  }
  func.func @transform_1(%arg0: i32) -> (i32, i32) {
    %c0_i32 = arith.constant 0 : i32
    %c0_i32_0 = arith.constant 0 : i32
    %c0_i32_1 = arith.constant 0 : i32
    return %c0_i32, %c0_i32_0 : i32, i32
  }
  func.func @transform_2(%arg0: i32) -> (i32, i32) {
    %c0_i32 = arith.constant 0 : i32
    %c0_i32_0 = arith.constant 0 : i32
    %c0_i32_1 = arith.constant 0 : i32
    return %c0_i32, %c0_i32_0 : i32, i32
  }
  func.func @transform_3(%arg0: i32) -> (i32, i32) {
    %c0_i32 = arith.constant 0 : i32
    %c0_i32_0 = arith.constant 0 : i32
    return %arg0, %c0_i32 : i32, i32
  }
}

module attributes {stable_mosaic.version = 11 : i64} {
  func.func @_bigru_kernel(%arg0: i32, %arg1: i32, %arg2: memref<8x8x384xf32, #tpu.memory_space<vmem>>, %arg3: memref<8x8x1xf32, #tpu.memory_space<vmem>>, %arg4: memref<1x128x384xf32, #tpu.memory_space<vmem>>, %arg5: memref<1x1x128xf32, #tpu.memory_space<vmem>>, %arg6: memref<8x8x128xf32, #tpu.memory_space<vmem>>, %arg7: memref<8x128xf32, #tpu.memory_space<vmem>>) attributes {dimension_semantics = [#tpu.dimension_semantics<parallel>, #tpu.dimension_semantics<arbitrary>], iteration_bounds = array<i64: 2, 1>, scalar_prefetch = 0 : i64, scratch_operands = 1 : i64, tpu.core_type = #tpu.core_type<tc>, window_params = [{transform_indices = @transform_0, window_bounds = array<i64: 8, 8, 384>}, {transform_indices = @transform_1, window_bounds = array<i64: 8, 8, 1>}, {transform_indices = @transform_2, window_bounds = array<i64: 1, 128, 384>}, {transform_indices = @transform_3, window_bounds = array<i64: 1, 1, 128>}, {transform_indices = @transform_4, window_bounds = array<i64: 8, 8, 128>}]} {
    %c0_i32 = arith.constant 0 : i32
    %0 = arith.cmpi eq, %arg1, %c0_i32 : i32
    %1 = arith.extui %0 : i1 to i32
    %c0_i32_0 = arith.constant 0 : i32
    %2 = arith.cmpi ne, %1, %c0_i32_0 : i32
    scf.if %2 {
      %cst = arith.constant 0.000000e+00 : f32
      %10 = vector.broadcast %cst : f32 to vector<8x128xf32>
      %c0_8 = arith.constant 0 : index
      %c0_9 = arith.constant 0 : index
      %11 = vector.load %arg7[%c0_8, %c0_9] : memref<8x128xf32, #tpu.memory_space<vmem>>, vector<8x128xf32>
      tpu.vector_store %arg7[%c0_8, %c0_9], %10 {strides = array<i32>} : memref<8x128xf32, #tpu.memory_space<vmem>>, vector<8x128xf32>,
    } else {
    }
    %c0 = arith.constant 0 : index
    %c0_1 = arith.constant 0 : index
    %c0_2 = arith.constant 0 : index
    %3 = vector.load %arg4[%c0, %c0_1, %c0_2] : memref<1x128x384xf32, #tpu.memory_space<vmem>>, vector<1x128x384xf32>
    %4 = vector.shape_cast %3 : vector<1x128x384xf32> to vector<128x384xf32>
    %c0_3 = arith.constant 0 : index
    %c0_4 = arith.constant 0 : index
    %c0_5 = arith.constant 0 : index
    %5 = vector.load %arg5[%c0_3, %c0_4, %c0_5] : memref<1x1x128xf32, #tpu.memory_space<vmem>>, vector<1x1x128xf32>
    %6 = vector.shape_cast %5 : vector<1x1x128xf32> to vector<1x128xf32>
    %7 = vector.shape_cast %6 : vector<1x128xf32> to vector<1x128xf32>
    %8 = vector.broadcast %7 : vector<1x128xf32> to vector<8x128xf32>
    %c0_i32_6 = arith.constant 0 : i32
    %c8_i32 = arith.constant 8 : i32
    %9 = arith.addi %c0_i32_6, %c8_i32 : i32
    %c1_i32 = arith.constant 1 : i32
    scf.for %arg8 = %c0_i32_6 to %9 step %c1_i32  : i32 {
      %c2_i32 = arith.constant 2 : i32
      %10 = arith.muli %c2_i32, %arg8 : i32
      %c7_i32 = arith.constant 7 : i32
      %11 = arith.subi %c7_i32, %10 : i32
      %12 = arith.muli %arg0, %11 : i32
      %13 = arith.addi %arg8, %12 : i32
      %14 = arith.index_cast %13 : i32 to index
      %c0_8 = arith.constant 0 : index
      %c0_9 = arith.constant 0 : index
      %15 = vector.load %arg2[%14, %c0_8, %c0_9] : memref<8x8x384xf32, #tpu.memory_space<vmem>>, vector<1x8x384xf32>
      %16 = vector.shape_cast %15 : vector<1x8x384xf32> to vector<8x384xf32>
      %17 = arith.index_cast %13 : i32 to index
      %c0_10 = arith.constant 0 : index
      %c0_11 = arith.constant 0 : index
      %18 = vector.load %arg3[%17, %c0_10, %c0_11] : memref<8x8x1xf32, #tpu.memory_space<vmem>>, vector<1x8x1xf32>
      %19 = vector.shape_cast %18 : vector<1x8x1xf32> to vector<8x1xf32>
      %c0_12 = arith.constant 0 : index
      %c0_13 = arith.constant 0 : index
      %20 = vector.load %arg7[%c0_12, %c0_13] : memref<8x128xf32, #tpu.memory_space<vmem>>, vector<8x128xf32>
      %cst = arith.constant dense<0.000000e+00> : vector<8x384xf32>
      %21 = tpu.matmul %20, %4, %cst {dimension_numbers = #tpu.dot_dimension_numbers<[1], [0], [0], [1], [0, 0, 1, 1], [], []>} : vector<8x128xf32>, vector<128x384xf32>, vector<8x384xf32> -> vector<8x384xf32>
      %22 = vector.extract_strided_slice %16 {offsets = [0, 0], sizes = [8, 128], strides = [1, 1]} : vector<8x384xf32> to vector<8x128xf32>
      %23 = vector.extract_strided_slice %21 {offsets = [0, 0], sizes = [8, 128], strides = [1, 1]} : vector<8x384xf32> to vector<8x128xf32>
      %24 = arith.addf %22, %23 : vector<8x128xf32>
      %25 = arith.negf %24 : vector<8x128xf32>
      %26 = math.exp %25 : vector<8x128xf32>
      %cst_14 = arith.constant 1.000000e+00 : f32
      %27 = vector.broadcast %cst_14 : f32 to vector<8x128xf32>
      %28 = arith.addf %27, %26 : vector<8x128xf32>
      %29 = arith.divf %27, %28 : vector<8x128xf32>
      %30 = vector.extract_strided_slice %16 {offsets = [0, 128], sizes = [8, 128], strides = [1, 1]} : vector<8x384xf32> to vector<8x128xf32>
      %31 = vector.extract_strided_slice %21 {offsets = [0, 128], sizes = [8, 128], strides = [1, 1]} : vector<8x384xf32> to vector<8x128xf32>
      %32 = arith.addf %30, %31 : vector<8x128xf32>
      %33 = arith.negf %32 : vector<8x128xf32>
      %34 = math.exp %33 : vector<8x128xf32>
      %cst_15 = arith.constant 1.000000e+00 : f32
      %35 = vector.broadcast %cst_15 : f32 to vector<8x128xf32>
      %36 = arith.addf %35, %34 : vector<8x128xf32>
      %37 = arith.divf %35, %36 : vector<8x128xf32>
      %38 = vector.extract_strided_slice %16 {offsets = [0, 256], sizes = [8, 128], strides = [1, 1]} : vector<8x384xf32> to vector<8x128xf32>
      %39 = vector.extract_strided_slice %21 {offsets = [0, 256], sizes = [8, 128], strides = [1, 1]} : vector<8x384xf32> to vector<8x128xf32>
      %40 = arith.addf %39, %8 : vector<8x128xf32>
      %41 = arith.mulf %29, %40 : vector<8x128xf32>
      %42 = arith.addf %38, %41 : vector<8x128xf32>
      %43 = math.tanh %42 : vector<8x128xf32>
      %44 = arith.subf %20, %43 : vector<8x128xf32>
      %45 = arith.mulf %37, %44 : vector<8x128xf32>
      %46 = arith.addf %43, %45 : vector<8x128xf32>
      %47 = arith.subf %46, %20 : vector<8x128xf32>
      %48 = vector.broadcast %19 : vector<8x1xf32> to vector<8x128xf32>
      %49 = arith.mulf %48, %47 : vector<8x128xf32>
      %50 = arith.addf %20, %49 : vector<8x128xf32>
      %c0_16 = arith.constant 0 : index
      %c0_17 = arith.constant 0 : index
      %51 = vector.load %arg7[%c0_16, %c0_17] : memref<8x128xf32, #tpu.memory_space<vmem>>, vector<8x128xf32>
      tpu.vector_store %arg7[%c0_16, %c0_17], %50 {strides = array<i32>} : memref<8x128xf32, #tpu.memory_space<vmem>>, vector<8x128xf32>,
      %52 = vector.broadcast %19 : vector<8x1xf32> to vector<8x128xf32>
      %53 = arith.mulf %52, %50 : vector<8x128xf32>
      %54 = arith.index_cast %13 : i32 to index
      %c0_18 = arith.constant 0 : index
      %c0_19 = arith.constant 0 : index
      %55 = vector.load %arg6[%54, %c0_18, %c0_19] : memref<8x8x128xf32, #tpu.memory_space<vmem>>, vector<1x8x128xf32>
      %56 = vector.shape_cast %55 : vector<1x8x128xf32> to vector<8x128xf32>
      %57 = vector.shape_cast %53 : vector<8x128xf32> to vector<1x8x128xf32>
      tpu.vector_store %arg6[%54, %c0_18, %c0_19], %57 {strides = array<i32>} : memref<8x8x128xf32, #tpu.memory_space<vmem>>, vector<1x8x128xf32>,
    }
    %c8_i32_7 = arith.constant 8 : i32
    return
  }
  func.func @transform_0(%arg0: i32, %arg1: i32) -> (i32, i32, i32) {
    %c2_i32 = arith.constant 2 : i32
    %0 = arith.muli %c2_i32, %arg1 : i32
    %c0_i32 = arith.constant 0 : i32
    %1 = arith.subi %c0_i32, %0 : i32
    %2 = arith.muli %arg0, %1 : i32
    %3 = arith.addi %arg1, %2 : i32
    %c0_i32_0 = arith.constant 0 : i32
    %c0_i32_1 = arith.constant 0 : i32
    return %3, %c0_i32_0, %arg0 : i32, i32, i32
  }
  func.func @transform_1(%arg0: i32, %arg1: i32) -> (i32, i32, i32) {
    %c2_i32 = arith.constant 2 : i32
    %0 = arith.muli %c2_i32, %arg1 : i32
    %c0_i32 = arith.constant 0 : i32
    %1 = arith.subi %c0_i32, %0 : i32
    %2 = arith.muli %arg0, %1 : i32
    %3 = arith.addi %arg1, %2 : i32
    %c0_i32_0 = arith.constant 0 : i32
    %c0_i32_1 = arith.constant 0 : i32
    %c0_i32_2 = arith.constant 0 : i32
    return %3, %c0_i32_0, %c0_i32_1 : i32, i32, i32
  }
  func.func @transform_2(%arg0: i32, %arg1: i32) -> (i32, i32, i32) {
    %c0_i32 = arith.constant 0 : i32
    %c0_i32_0 = arith.constant 0 : i32
    %c0_i32_1 = arith.constant 0 : i32
    return %arg0, %c0_i32, %c0_i32_0 : i32, i32, i32
  }
  func.func @transform_3(%arg0: i32, %arg1: i32) -> (i32, i32, i32) {
    %c0_i32 = arith.constant 0 : i32
    %c0_i32_0 = arith.constant 0 : i32
    %c0_i32_1 = arith.constant 0 : i32
    return %arg0, %c0_i32, %c0_i32_0 : i32, i32, i32
  }
  func.func @transform_4(%arg0: i32, %arg1: i32) -> (i32, i32, i32) {
    %c2_i32 = arith.constant 2 : i32
    %0 = arith.muli %c2_i32, %arg1 : i32
    %c0_i32 = arith.constant 0 : i32
    %1 = arith.subi %c0_i32, %0 : i32
    %2 = arith.muli %arg0, %1 : i32
    %3 = arith.addi %arg1, %2 : i32
    %c0_i32_0 = arith.constant 0 : i32
    %c0_i32_1 = arith.constant 0 : i32
    return %3, %c0_i32_0, %arg0 : i32, i32, i32
  }
}

</mosaic_0001>

<bundles_post_ra>
// kernel: text_encoder_forward.2
= control target key start
LH: loop header
LB: loop body
LE: loop exit
PB: predicated region body
PF: predicated region fallthrough
CT: control target
= control target key end

     0   :  { %v527_v3 = vmov 0.0   ;;  %vm78_vm0 = vcmask 261120   ;;  %v48_v33 = vlaneseq  ;;  %s889_s1 = inlined_call_operand.vmem [shape: f32[32,768], index: 1, kind: input, shape index: {}]   ;;  %s890_s0 = inlined_call_operand.vmem [shape: f32[64,32], index: 0, kind: input, shape index: {}]   ;;  %s891_s2 = inlined_call_operand.vmem [shape: f32[1,768], index: 2, kind: input, shape index: {}]   ;;  %s892_s3 = inlined_call_operand.vmem [shape: f32[64,768], index: 3, kind: output, shape index: {}]  }
   0x1   :  { %v41_v0 = vld [vmem:[%s889_s1 + $0x98] sm:$0xff]  ;;  %v40_v1 = vld [vmem:[%s889_s1 + $0x90] sm:$0xff]  ;;  %v35_v2 = vld [vmem:[%s889_s1 + $0x68] sm:$0xff]  ;;  %167 = vmatprep.mubr.f32.mxu0 %v527_v3  ;;  %191 = vmatprep.mubr.f32.mxu1 %v527_v3 }
   0x2   :  { %127 = vmatprep.subr.mxu0 %v41_v0  ;;  %518 = vmatprep.subr.mxu1 %v41_v0  ;;  %v34_v4 = vld [vmem:[%s889_s1 + $0x60] sm:$0xff]  ;;  %v29_v5 = vld [vmem:[%s889_s1 + $0x38] sm:$0xff]  ;;  %v28_v6 = vld [vmem:[%s889_s1 + $0x30] sm:$0xff]  ;;  %v49_v34 = vshrl.u32 %v48_v33, 7 }
   0x3   :  { %128 = vmatpush1.msra.mxu0 %v40_v1  ;;  %522 = vmatpush1.msra.mxu1 %v40_v1  ;;  %v23_v7 = vld [vmem:[%s889_s1 + $0x8] sm:$0xff]  ;;  %v22_v8 = vld [vmem:[%s889_s1] sm:$0xff]  ;;  %v45_v12 = vld [vmem:[%s889_s1 + $0xb8] sm:$0xff] }
   0x4   :  { %129 = vmatprep.subr.mxu0 %v35_v2  ;;  %519 = vmatprep.subr.mxu1 %v35_v2  ;;  %v14_v9 = vld [vmem:[%s890_s0] sm:$0xff]  ;;  %v43_v11 = vld [vmem:[%s889_s1 + $0xa8] sm:$0xff]  ;;  %v44_v14 = vld [vmem:[%s889_s1 + $0xb0] sm:$0xff]  ;;  %v50_v35 = vsub.s32 0, %v49_v34  ;;  %v54_v37 = vsub.s32 1, %v49_v34  ;;  %v58_v60 = vsub.s32 2, %v49_v34 }
   0x5   :  { %130 = vmatpush1.msra.mxu0 %v34_v4  ;;  %523 = vmatpush1.msra.mxu1 %v34_v4  ;;  %v580_v10 = vld [vmem:[%s890_s0 + $0x20] sm:$0xff]  ;;  %v15_v15 = vld [vmem:[%s890_s0 + $0x8] sm:$0xff]  ;;  %v37_v17 = vld [vmem:[%s889_s1 + $0x78] sm:$0xff]  ;;  %v66_v61 = vsub.s32 4, %v49_v34  ;;  %v62_v2 = vsub.s32 3, %v49_v34 }
   0x6   :  { %131 = vmatprep.subr.mxu0 %v29_v5  ;;  %520 = vmatprep.subr.mxu1 %v29_v5  ;;  %v42_v13 = vld [vmem:[%s889_s1 + $0xa0] sm:$0xff]  ;;  %v603_v16 = vld [vmem:[%s890_s0 + $0x28] sm:$0xff]  ;;  %v36_v19 = vld [vmem:[%s889_s1 + $0x70] sm:$0xff] }
   0x7   :  { %132 = vmatpush1.msra.mxu0 %v28_v6  ;;  %524 = vmatpush1.msra.mxu1 %v28_v6  ;;  %v39_v18 = vld [vmem:[%s889_s1 + $0x88] sm:$0xff]  ;;  %v38_v20 = vld [vmem:[%s889_s1 + $0x80] sm:$0xff]  ;;  %v16_v21 = vld [vmem:[%s890_s0 + $0x10] sm:$0xff] }
   0x8   :  { %133 = vmatprep.subr.mxu0 %v23_v7  ;;  %521 = vmatprep.subr.mxu1 %v23_v7  ;;  %v20_v22 = vld [vmem:[%s890_s0 + $0x30] sm:$0xff]  ;;  %v31_v23 = vld [vmem:[%s889_s1 + $0x48] sm:$0xff]  ;;  %v33_v24 = vld [vmem:[%s889_s1 + $0x58] sm:$0xff] }
   0x9   :  { %134 = vmatpush1.msra.mxu0 %v22_v8  ;;  %525 = vmatpush1.msra.mxu1 %v22_v8  ;;  %v30_v25 = vld [vmem:[%s889_s1 + $0x40] sm:$0xff]  ;;  %v32_v26 = vld [vmem:[%s889_s1 + $0x50] sm:$0xff]  ;;  %v17_v27 = vld [vmem:[%s890_s0 + $0x18] sm:$0xff] }
   0xa   :  { %494 = vmatmul.mubr.msk.f32.vlgmr.msra.gmra.mxu0 %vm78_vm0, %v14_v9  ;;  %498 = vmatmul.mubr.msk.f32.vlgmr.msra.gmra.mxu1 %vm78_vm0, %v580_v10  ;;  %v21_v28 = vld [vmem:[%s890_s0 + $0x38] sm:$0xff]  ;;  %v27_v30 = vld [vmem:[%s889_s1 + $0x28] sm:$0xff]  ;;  %v24_v31 = vld [vmem:[%s889_s1 + $0x10] sm:$0xff] }
   0xb   :  { %240 = vmatprep.subr.mxu1 %v43_v11  ;;  %353 = vmatprep.subr.mxu0 %v45_v12  ;;  %v25_v29 = vld [vmem:[%s889_s1 + $0x18] sm:$0xff]  ;;  %v26_v32 = vld [vmem:[%s889_s1 + $0x20] sm:$0xff] }
   0xc   :  { %241 = vmatpush1.msra.mxu1 %v42_v13  ;;  %354 = vmatpush1.msra.mxu0 %v44_v14  ;;  %v46_v36 = vld [vmem:[%s891_s2] sm:$0x3f] }
   0xd   :  { %173 = vmatprep.mubr.f32.mxu0 %v527_v3  ;;  %197 = vmatprep.mubr.f32.mxu1 %v527_v3  ;;  %v51_v38 = vrot.slane %v46_v36, %v50_v35  ;;  %v55_v39 = vrot.slane %v46_v36, %v54_v37  ;;  %v741_v8 = vrot.slane %v46_v36, %v58_v60 }
   0xe   :  { %495 = vmatmul.mubr.msk.f32.gmra.mxu0 %vm78_vm0, %v15_v15  ;;  %499 = vmatmul.mubr.msk.f32.gmra.mxu1 %vm78_vm0, %v603_v16  ;;  %v751_v14 = vrot.slane %v46_v36, %v62_v2 }
   0xf   :  { %242 = vmatprep.subr.mxu1 %v37_v17  ;;  %355 = vmatprep.subr.mxu0 %v39_v18 }
  0x10   :  { %243 = vmatpush1.msra.mxu1 %v36_v19  ;;  %356 = vmatpush1.msra.mxu0 %v38_v20 }
  0x11   :  { %179 = vmatprep.mubr.f32.mxu0 %v527_v3  ;;  %203 = vmatprep.mubr.f32.mxu1 %v527_v3 }
  0x12   :  { %496 = vmatmul.mubr.msk.f32.gmra.mxu0 %vm78_vm0, %v16_v21  ;;  %500 = vmatmul.mubr.msk.f32.gmra.mxu1 %vm78_vm0, %v20_v22 }
  0x13   :  { %244 = vmatprep.subr.mxu1 %v31_v23  ;;  %357 = vmatprep.subr.mxu0 %v33_v24 }
  0x14   :  { %245 = vmatpush1.msra.mxu1 %v30_v25  ;;  %358 = vmatpush1.msra.mxu0 %v32_v26 }
  0x15   :  { %185 = vmatprep.mubr.f32.mxu0 %v527_v3  ;;  %209 = vmatprep.mubr.f32.mxu1 %v527_v3 }
  0x16   :  { %497 = vmatmul.mubr.msk.f32.gmra.mxu0 %vm78_vm0, %v17_v27  ;;  %501 = vmatmul.mubr.msk.f32.gmra.mxu1 %vm78_vm0, %v21_v28 }
  0x17   :  { %246 = vmatprep.subr.mxu1 %v25_v29  ;;  %359 = vmatprep.subr.mxu0 %v27_v30 }
  0x18   :  { %247 = vmatpush1.msra.mxu1 %v24_v31  ;;  %360 = vmatpush1.msra.mxu0 %v26_v32 }
  0x19   :  { %280 = vmatprep.mubr.f32.mxu1 %v527_v3  ;;  %393 = vmatprep.mubr.f32.mxu0 %v527_v3 }
  0x1a   :  { %502 = vmatmul.mubr.msk.f32.vlgmr.msra.gmra.mxu1 %vm78_vm0, %v14_v9  ;;  %510 = vmatmul.mubr.msk.f32.vlgmr.msra.gmra.mxu0 %vm78_vm0, %v14_v9  ;;  %v743_v9 = vrot.slane %v46_v36, %v66_v61 }
  0x1b   :  { %286 = vmatprep.mubr.f32.mxu1 %v527_v3  ;;  %399 = vmatprep.mubr.f32.mxu0 %v527_v3 }
  0x1e   :  { %503 = vmatmul.mubr.msk.f32.gmra.mxu1 %vm78_vm0, %v15_v15  ;;  %511 = vmatmul.mubr.msk.f32.gmra.mxu0 %vm78_vm0, %v15_v15 }
  0x1f   :  { %292 = vmatprep.mubr.f32.mxu1 %v527_v3  ;;  %405 = vmatprep.mubr.f32.mxu0 %v527_v3 }
  0x22   :  { %504 = vmatmul.mubr.msk.f32.gmra.mxu1 %vm78_vm0, %v16_v21  ;;  %512 = vmatmul.mubr.msk.f32.gmra.mxu0 %vm78_vm0, %v16_v21 }
  0x23   :  { %298 = vmatprep.mubr.f32.mxu1 %v527_v3  ;;  %411 = vmatprep.mubr.f32.mxu0 %v527_v3 }
  0x26   :  { %505 = vmatmul.mubr.msk.f32.gmra.mxu1 %vm78_vm0, %v17_v27  ;;  %513 = vmatmul.mubr.msk.f32.gmra.mxu0 %vm78_vm0, %v17_v27 }
  0x27   :  { %304 = vmatprep.mubr.f32.mxu1 %v527_v3  ;;  %417 = vmatprep.mubr.f32.mxu0 %v527_v3 }
  0x2a   :  { %506 = vmatmul.mubr.msk.f32.gmra.mxu1 %vm78_vm0, %v580_v10  ;;  %514 = vmatmul.mubr.msk.f32.gmra.mxu0 %vm78_vm0, %v580_v10 }
  0x2b   :  { %310 = vmatprep.mubr.f32.mxu1 %v527_v3  ;;  %423 = vmatprep.mubr.f32.mxu0 %v527_v3 }
  0x2e   :  { %507 = vmatmul.mubr.msk.f32.gmra.mxu1 %vm78_vm0, %v603_v16  ;;  %515 = vmatmul.mubr.msk.f32.gmra.mxu0 %vm78_vm0, %v603_v16 }
  0x2f   :  { %316 = vmatprep.mubr.f32.mxu1 %v527_v3  ;;  %429 = vmatprep.mubr.f32.mxu0 %v527_v3 }
  0x32   :  { %508 = vmatmul.mubr.msk.f32.gmra.mxu1 %vm78_vm0, %v20_v22  ;;  %516 = vmatmul.mubr.msk.f32.gmra.mxu0 %vm78_vm0, %v20_v22 }
  0x33   :  { %322 = vmatprep.mubr.f32.mxu1 %v527_v3  ;;  %435 = vmatprep.mubr.f32.mxu0 %v527_v3  ;;  %v70_v3 = vsub.s32 5, %v49_v34 }
  0x35   :  { %v753_v15 = vrot.slane %v46_v36, %v70_v3 }
  0x36   :  { %509 = vmatmul.mubr.msk.f32.gmra.mxu1 %vm78_vm0, %v21_v28  ;;  %517 = vmatmul.mubr.msk.f32.gmra.mxu0 %vm78_vm0, %v21_v28 }
  0xca   :  { %v169_v40 = vpop.f32.mrf.mxu0  ;;  %v193_v41 = vpop.f32.mrf.mxu1 }
  0xcb   :  { %v170_v42 = vadd.f32 %v169_v40, %v51_v38  ;;  %v194_v43 = vadd.f32 %v193_v41, %v51_v38 }
  0xcc   :  { %v171_v44 = vpop.f32.mrf.mxu0  ;;  %v195_v45 = vpop.f32.mrf.mxu1 }
  0xcd   :  { %442 = vst [vmem:[%s892_s3] sm:$0xff] %v170_v42  ;;  %466 = vst [vmem:[%s892_s3 + $0xc0] sm:$0xff] %v194_v43  ;;  %v172_v46 = vadd.f32 %v171_v44, %v55_v39  ;;  %v196_v47 = vadd.f32 %v195_v45, %v55_v39 }
  0xce   :  { %v175_v48 = vpop.f32.mrf.mxu0  ;;  %v199_v49 = vpop.f32.mrf.mxu1 }
  0xcf   :  { %443 = vst [vmem:[%s892_s3 + $0x8] sm:$0xff] %v172_v46  ;;  %467 = vst [vmem:[%s892_s3 + $0xc8] sm:$0xff] %v196_v47  ;;  %v176_v50 = vadd.f32 %v175_v48, %v51_v38  ;;  %v200_v51 = vadd.f32 %v199_v49, %v51_v38 }
  0xd0   :  { %v177_v52 = vpop.f32.mrf.mxu0  ;;  %v201_v53 = vpop.f32.mrf.mxu1 }
  0xd1   :  { %448 = vst [vmem:[%s892_s3 + $0x30] sm:$0xff] %v176_v50  ;;  %472 = vst [vmem:[%s892_s3 + $0xf0] sm:$0xff] %v200_v51  ;;  %v178_v54 = vadd.f32 %v177_v52, %v55_v39  ;;  %v202_v55 = vadd.f32 %v201_v53, %v55_v39 }
  0xd2   :  { %v181_v56 = vpop.f32.mrf.mxu0  ;;  %v205_v57 = vpop.f32.mrf.mxu1 }
  0xd3   :  { %449 = vst [vmem:[%s892_s3 + $0x38] sm:$0xff] %v178_v54  ;;  %473 = vst [vmem:[%s892_s3 + $0xf8] sm:$0xff] %v202_v55  ;;  %v182_v58 = vadd.f32 %v181_v56, %v51_v38  ;;  %v206_v59 = vadd.f32 %v205_v57, %v51_v38 }
  0xd4   :  { %v183_v62 = vpop.f32.mrf.mxu0  ;;  %v207_v63 = vpop.f32.mrf.mxu1 }
  0xd5   :  { %454 = vst [vmem:[%s892_s3 + $0x60] sm:$0xff] %v182_v58  ;;  %478 = vst [vmem:[%s892_s3 + $0x120] sm:$0xff] %v206_v59  ;;  %v184_v0 = vadd.f32 %v183_v62, %v55_v39  ;;  %v208_v1 = vadd.f32 %v207_v63, %v55_v39 }
  0xd6   :  { %v187_v4 = vpop.f32.mrf.mxu0  ;;  %v211_v5 = vpop.f32.mrf.mxu1 }
  0xd7   :  { %455 = vst [vmem:[%s892_s3 + $0x68] sm:$0xff] %v184_v0  ;;  %479 = vst [vmem:[%s892_s3 + $0x128] sm:$0xff] %v208_v1  ;;  %v188_v6 = vadd.f32 %v187_v4, %v51_v38  ;;  %v212_v7 = vadd.f32 %v211_v5, %v51_v38 }
  0xd8   :  { %v189_v10 = vpop.f32.mrf.mxu0  ;;  %v213_v11 = vpop.f32.mrf.mxu1 }
  0xd9   :  { %460 = vst [vmem:[%s892_s3 + $0x90] sm:$0xff] %v188_v6  ;;  %484 = vst [vmem:[%s892_s3 + $0x150] sm:$0xff] %v212_v7  ;;  %v190_v12 = vadd.f32 %v189_v10, %v55_v39  ;;  %v214_v13 = vadd.f32 %v213_v11, %v55_v39 }
  0xda   :  { %v282_v16 = vpop.f32.mrf.mxu1  ;;  %v395_v17 = vpop.f32.mrf.mxu0 }
  0xdb   :  { %461 = vst [vmem:[%s892_s3 + $0x98] sm:$0xff] %v190_v12  ;;  %485 = vst [vmem:[%s892_s3 + $0x158] sm:$0xff] %v214_v13  ;;  %v283_v18 = vadd.f32 %v282_v16, %v741_v8  ;;  %v396_v19 = vadd.f32 %v395_v17, %v743_v9 }
  0xdc   :  { %v284_v20 = vpop.f32.mrf.mxu1  ;;  %v397_v21 = vpop.f32.mrf.mxu0 }
  0xdd   :  { %444 = vst [vmem:[%s892_s3 + $0x10] sm:$0xff] %v283_v18  ;;  %446 = vst [vmem:[%s892_s3 + $0x20] sm:$0xff] %v396_v19  ;;  %v285_v22 = vadd.f32 %v284_v20, %v751_v14  ;;  %v398_v23 = vadd.f32 %v397_v21, %v753_v15 }
  0xde   :  { %v288_v24 = vpop.f32.mrf.mxu1  ;;  %v401_v25 = vpop.f32.mrf.mxu0 }
  0xdf   :  { %445 = vst [vmem:[%s892_s3 + $0x18] sm:$0xff] %v285_v22  ;;  %447 = vst [vmem:[%s892_s3 + $0x28] sm:$0xff] %v398_v23  ;;  %v289_v26 = vadd.f32 %v288_v24, %v741_v8  ;;  %v402_v27 = vadd.f32 %v401_v25, %v743_v9 }
  0xe0   :  { %v290_v28 = vpop.f32.mrf.mxu1  ;;  %v403_v29 = vpop.f32.mrf.mxu0 }
  0xe1   :  { %450 = vst [vmem:[%s892_s3 + $0x40] sm:$0xff] %v289_v26  ;;  %452 = vst [vmem:[%s892_s3 + $0x50] sm:$0xff] %v402_v27  ;;  %v291_v30 = vadd.f32 %v290_v28, %v751_v14  ;;  %v404_v31 = vadd.f32 %v403_v29, %v753_v15 }
  0xe2   :  { %v294_v32 = vpop.f32.mrf.mxu1  ;;  %v407_v33 = vpop.f32.mrf.mxu0 }
  0xe3   :  { %451 = vst [vmem:[%s892_s3 + $0x48] sm:$0xff] %v291_v30  ;;  %453 = vst [vmem:[%s892_s3 + $0x58] sm:$0xff] %v404_v31  ;;  %v295_v34 = vadd.f32 %v294_v32, %v741_v8  ;;  %v408_v35 = vadd.f32 %v407_v33, %v743_v9 }
  0xe4   :  { %v296_v36 = vpop.f32.mrf.mxu1  ;;  %v409_v37 = vpop.f32.mrf.mxu0 }
  0xe5   :  { %456 = vst [vmem:[%s892_s3 + $0x70] sm:$0xff] %v295_v34  ;;  %458 = vst [vmem:[%s892_s3 + $0x80] sm:$0xff] %v408_v35  ;;  %v297_v38 = vadd.f32 %v296_v36, %v751_v14  ;;  %v410_v39 = vadd.f32 %v409_v37, %v753_v15 }
  0xe6   :  { %v300_v40 = vpop.f32.mrf.mxu1  ;;  %v413_v41 = vpop.f32.mrf.mxu0 }
  0xe7   :  { %457 = vst [vmem:[%s892_s3 + $0x78] sm:$0xff] %v297_v38  ;;  %459 = vst [vmem:[%s892_s3 + $0x88] sm:$0xff] %v410_v39  ;;  %v301_v42 = vadd.f32 %v300_v40, %v741_v8  ;;  %v414_v43 = vadd.f32 %v413_v41, %v743_v9 }
  0xe8   :  { %v302_v44 = vpop.f32.mrf.mxu1  ;;  %v415_v45 = vpop.f32.mrf.mxu0 }
  0xe9   :  { %462 = vst [vmem:[%s892_s3 + $0xa0] sm:$0xff] %v301_v42  ;;  %464 = vst [vmem:[%s892_s3 + $0xb0] sm:$0xff] %v414_v43  ;;  %v303_v46 = vadd.f32 %v302_v44, %v751_v14  ;;  %v416_v47 = vadd.f32 %v415_v45, %v753_v15 }
  0xea   :  { %v306_v48 = vpop.f32.mrf.mxu1  ;;  %v419_v49 = vpop.f32.mrf.mxu0 }
  0xeb   :  { %463 = vst [vmem:[%s892_s3 + $0xa8] sm:$0xff] %v303_v46  ;;  %465 = vst [vmem:[%s892_s3 + $0xb8] sm:$0xff] %v416_v47  ;;  %v307_v50 = vadd.f32 %v306_v48, %v741_v8  ;;  %v420_v51 = vadd.f32 %v419_v49, %v743_v9 }
  0xec   :  { %v308_v52 = vpop.f32.mrf.mxu1  ;;  %v421_v53 = vpop.f32.mrf.mxu0 }
  0xed   :  { %468 = vst [vmem:[%s892_s3 + $0xd0] sm:$0xff] %v307_v50  ;;  %470 = vst [vmem:[%s892_s3 + $0xe0] sm:$0xff] %v420_v51  ;;  %v309_v54 = vadd.f32 %v308_v52, %v751_v14  ;;  %v422_v55 = vadd.f32 %v421_v53, %v753_v15 }
  0xee   :  { %v312_v56 = vpop.f32.mrf.mxu1  ;;  %v425_v57 = vpop.f32.mrf.mxu0 }
  0xef   :  { %469 = vst [vmem:[%s892_s3 + $0xd8] sm:$0xff] %v309_v54  ;;  %471 = vst [vmem:[%s892_s3 + $0xe8] sm:$0xff] %v422_v55  ;;  %v313_v58 = vadd.f32 %v312_v56, %v741_v8  ;;  %v426_v59 = vadd.f32 %v425_v57, %v743_v9 }
  0xf0   :  { %v314_v60 = vpop.f32.mrf.mxu1  ;;  %v427_v61 = vpop.f32.mrf.mxu0 }
  0xf1   :  { %474 = vst [vmem:[%s892_s3 + $0x100] sm:$0xff] %v313_v58  ;;  %476 = vst [vmem:[%s892_s3 + $0x110] sm:$0xff] %v426_v59  ;;  %v315_v62 = vadd.f32 %v314_v60, %v751_v14  ;;  %v428_v63 = vadd.f32 %v427_v61, %v753_v15 }
  0xf2   :  { %v318_v0 = vpop.f32.mrf.mxu1  ;;  %v431_v1 = vpop.f32.mrf.mxu0 }
  0xf3   :  { %475 = vst [vmem:[%s892_s3 + $0x108] sm:$0xff] %v315_v62  ;;  %477 = vst [vmem:[%s892_s3 + $0x118] sm:$0xff] %v428_v63  ;;  %v319_v2 = vadd.f32 %v318_v0, %v741_v8  ;;  %v432_v3 = vadd.f32 %v431_v1, %v743_v9 }
  0xf4   :  { %v320_v4 = vpop.f32.mrf.mxu1  ;;  %v433_v5 = vpop.f32.mrf.mxu0 }
  0xf5   :  { %480 = vst [vmem:[%s892_s3 + $0x130] sm:$0xff] %v319_v2  ;;  %482 = vst [vmem:[%s892_s3 + $0x140] sm:$0xff] %v432_v3  ;;  %v321_v6 = vadd.f32 %v320_v4, %v751_v14  ;;  %v434_v7 = vadd.f32 %v433_v5, %v753_v15 }
  0xf6   :  { %v324_v10 = vpop.f32.mrf.mxu1  ;;  %v437_v11 = vpop.f32.mrf.mxu0 }
  0xf7   :  { %481 = vst [vmem:[%s892_s3 + $0x138] sm:$0xff] %v321_v6  ;;  %483 = vst [vmem:[%s892_s3 + $0x148] sm:$0xff] %v434_v7  ;;  %v325_v12 = vadd.f32 %v324_v10, %v741_v8  ;;  %v438_v13 = vadd.f32 %v437_v11, %v743_v9 }
  0xf8   :  { %v326_v16 = vpop.f32.mrf.mxu1  ;;  %v439_v17 = vpop.f32.mrf.mxu0 }
  0xf9   :  { %486 = vst [vmem:[%s892_s3 + $0x160] sm:$0xff] %v325_v12  ;;  %488 = vst [vmem:[%s892_s3 + $0x170] sm:$0xff] %v438_v13  ;;  %v327_v18 = vadd.f32 %v326_v16, %v751_v14  ;;  %v440_v19 = vadd.f32 %v439_v17, %v753_v15 }
  0xfb   :  { %487 = vst [vmem:[%s892_s3 + $0x168] sm:$0xff] %v327_v18  ;;  %489 = vst [vmem:[%s892_s3 + $0x178] sm:$0xff] %v440_v19 }

// kernel: text_encoder_forward.3
= control target key start
LH: loop header
LB: loop body
LE: loop exit
PB: predicated region body
PF: predicated region fallthrough
CT: control target
= control target key end

     0   :  { %s1058_s15 = smov 0   ;;  %s1060_s16 = smov 0   ;;  %s1446_s0 = inlined_call_operand.vmem [shape: f32[8,8,768], index: 0, kind: input, shape index: {}]   ;;  %s1447_s1 = inlined_call_operand.vmem [shape: f32[8,8,1], index: 1, kind: input, shape index: {}]   ;;  %s1448_s2 = inlined_call_operand.vmem [shape: f32[2,128,384], index: 2, kind: input, shape index: {}]   ;;  %s1449_s3 = inlined_call_operand.vmem [shape: f32[2,1,128], index: 3, kind: input, shape index: {}]   ;;  %s1450_s4 = inlined_call_operand.vmem [shape: f32[8,8,256], index: 4, kind: output, shape index: {}]  }
   0x1   :  { %s1062_s17 = smov 0   ;;  %s1064_s18 = smov 0  }
   0x2   :  { %s1066_s19 = smov 0  }
   0x3 LB: > { %s26_s20 = sadd.s32 1, %s1019_s18  ;;  %s842_s21 = sadd.s32 4294967295, %s1023_s19   ;;  %s1023_s19 = sphi %s1066_s19, %s14_s19   ;;  %s1019_s18 = sphi %s1064_s18, %s1461_s18   ;;  %s1015_s17 = sphi %s1062_s17, %s1460_s17   ;;  %s1011_s16 = sphi %s1060_s16, %s1459_s16   ;;  %s1007_s15 = sphi %s1058_s15, %s1458_s15  }
   0x4   : > { %p28_p0 = scmp.ge.s32.totalorder %s26_s20, 2  ;;  %p50_p1 = scmp.ne.s32.totalorder %s1011_s16, %s1007_s15 }
   0x5   : > { %p51_p2 = scmp.eq.s32.totalorder %s1023_s19, 0  ;;  %p176_p4 = scmp.eq.s32.totalorder %s842_s21, 1 }
   0x6   : > { %s1463_s20 = smov (%p28_p0, %s26_s20), 0  ;;  %s43_s23 = sadd.s32 1, %s1011_s16 }
   0x7   : > { %p52_p3 = por %p51_p2, %p50_p1  ;;  %s39_s22 = ssub.s32 %s1019_s18, %s1463_s20 }
   0x8   : > { %p41_p5 = scmp.eq.s32.totalorder %s39_s22, 0  ;;  %p1093_p6 = por %p176_p4, %p50_p1 }
   0x9   : > { %p845_p7 = scmp.ge.s32.totalorder %s1023_s19, 2 }
   0xa   : > { %s1098_s25 = scalar_select %p41_p5, %s1011_s16, %s43_s23  }
   0xb   : > { %198 = sbr.rel (%p845_p7) target bundleno = 33 (0x21), region = 16 }
  0x10   : > { %201 = sbr.rel (!%p52_p3) target bundleno = 33 (0x21), region = 20  ;;  %s203_s26 = sand.u32 (%p52_p3), 1, %s1011_s16  }
  0x11   : > { %s861_s27 = smul.u32 (%p52_p3), 24, %s1019_s18 }
  0x12   : > { %s915_s28 = smul.u32 (%p52_p3), 192, %s203_s26 }
  0x13   : > { %s1106_s5 = scalar_lea.vmem (%p52_p3), %s1446_s0, %s861_s27 }
  0x14   : > { %v228_v0 = vld [vmem:[%s1106_s5] sm:$0xff] (%p52_p3)  ;;  %v230_v1 = vld [vmem:[%s1106_s5 + $0x8] sm:$0xff] (%p52_p3)  ;;  %v232_v2 = vld [vmem:[%s1106_s5 + $0x10] sm:$0xff] (%p52_p3)  ;;  %s1111_s6 = scalar_lea.vmem (%p52_p3), [#allocation3], %s915_s28 }
  0x15   : > { %229 = vst [vmem:[%s1111_s6] sm:$0xff] %v228_v0  ;;  %231 = vst [vmem:[%s1111_s6 + $0x8] sm:$0xff] %v230_v1  ;;  %v234_v3 = vld [vmem:[%s1106_s5 + $0x30] sm:$0xff]  ;;  %v236_v4 = vld [vmem:[%s1106_s5 + $0x38] sm:$0xff] }
  0x16   : > { %233 = vst [vmem:[%s1111_s6 + $0x10] sm:$0xff] %v232_v2  ;;  %v238_v5 = vld [vmem:[%s1106_s5 + $0x40] sm:$0xff]  ;;  %235 = vst [vmem:[%s1111_s6 + $0x18] sm:$0xff] %v234_v3  ;;  %v242_v7 = vld [vmem:[%s1106_s5 + $0x68] sm:$0xff] }
  0x17   : > { %237 = vst [vmem:[%s1111_s6 + $0x20] sm:$0xff] %v236_v4  ;;  %239 = vst [vmem:[%s1111_s6 + $0x28] sm:$0xff] %v238_v5  ;;  %v240_v6 = vld [vmem:[%s1106_s5 + $0x60] sm:$0xff]  ;;  %v244_v8 = vld [vmem:[%s1106_s5 + $0x70] sm:$0xff] }
  0x18   : > { %241 = vst [vmem:[%s1111_s6 + $0x30] sm:$0xff] %v240_v6  ;;  %243 = vst [vmem:[%s1111_s6 + $0x38] sm:$0xff] %v242_v7  ;;  %v246_v9 = vld [vmem:[%s1106_s5 + $0x90] sm:$0xff]  ;;  %v248_v10 = vld [vmem:[%s1106_s5 + $0x98] sm:$0xff] }
  0x19   : > { %245 = vst [vmem:[%s1111_s6 + $0x40] sm:$0xff] %v244_v8  ;;  %v250_v11 = vld [vmem:[%s1106_s5 + $0xa0] sm:$0xff]  ;;  %247 = vst [vmem:[%s1111_s6 + $0x48] sm:$0xff] %v246_v9  ;;  %v254_v13 = vld [vmem:[%s1106_s5 + $0xc8] sm:$0xff] }
  0x1a   : > { %249 = vst [vmem:[%s1111_s6 + $0x50] sm:$0xff] %v248_v10  ;;  %251 = vst [vmem:[%s1111_s6 + $0x58] sm:$0xff] %v250_v11  ;;  %v252_v12 = vld [vmem:[%s1106_s5 + $0xc0] sm:$0xff]  ;;  %v256_v14 = vld [vmem:[%s1106_s5 + $0xd0] sm:$0xff] }
  0x1b   : > { %253 = vst [vmem:[%s1111_s6 + $0x60] sm:$0xff] %v252_v12  ;;  %255 = vst [vmem:[%s1111_s6 + $0x68] sm:$0xff] %v254_v13  ;;  %v258_v15 = vld [vmem:[%s1106_s5 + $0xf0] sm:$0xff]  ;;  %v260_v16 = vld [vmem:[%s1106_s5 + $0xf8] sm:$0xff] }
  0x1c   : > { %257 = vst [vmem:[%s1111_s6 + $0x70] sm:$0xff] %v256_v14  ;;  %v262_v17 = vld [vmem:[%s1106_s5 + $0x100] sm:$0xff]  ;;  %259 = vst [vmem:[%s1111_s6 + $0x78] sm:$0xff] %v258_v15  ;;  %v266_v19 = vld [vmem:[%s1106_s5 + $0x128] sm:$0xff] }
  0x1d   : > { %261 = vst [vmem:[%s1111_s6 + $0x80] sm:$0xff] %v260_v16  ;;  %263 = vst [vmem:[%s1111_s6 + $0x88] sm:$0xff] %v262_v17  ;;  %v264_v18 = vld [vmem:[%s1106_s5 + $0x120] sm:$0xff]  ;;  %v268_v20 = vld [vmem:[%s1106_s5 + $0x130] sm:$0xff] }
  0x1e   : > { %265 = vst [vmem:[%s1111_s6 + $0x90] sm:$0xff] %v264_v18  ;;  %267 = vst [vmem:[%s1111_s6 + $0x98] sm:$0xff] %v266_v19  ;;  %v270_v21 = vld [vmem:[%s1106_s5 + $0x150] sm:$0xff]  ;;  %v272_v22 = vld [vmem:[%s1106_s5 + $0x158] sm:$0xff] }
  0x1f   : > { %269 = vst [vmem:[%s1111_s6 + $0xa0] sm:$0xff] %v268_v20  ;;  %v274_v23 = vld [vmem:[%s1106_s5 + $0x160] sm:$0xff]  ;;  %271 = vst [vmem:[%s1111_s6 + $0xa8] sm:$0xff] %v270_v21 }
  0x20   : > { %273 = vst [vmem:[%s1111_s6 + $0xb0] sm:$0xff] %v272_v22  ;;  %275 = vst [vmem:[%s1111_s6 + $0xb8] sm:$0xff] %v274_v23 }
  0x21 PF: > { %p848_p8 = scmp.ge.s32.totalorder %s1023_s19, 1  ;;  %p311_p9 = scmp.lt.s32.totalorder %s1023_s19, 3 }
  0x23   : > { %p312_p10 = pnand %p848_p8, %p311_p9 }
  0x25   : > { %315 = sbr.rel (%p312_p10) target bundleno = 371 (0x173), region = 55 }
  0x2a   : > { %s318_s7 = sand.u32 1, %s1007_s15   ;;  %p379_p11 = scmp.lt.s32.totalorder %s1015_s17, 1  ;;  %v1029_v24 = vmov 0.0  }
  0x2b   : > { %s1162_s8 = smul.u32 192, %s318_s7  ;;  %s1164_s9 = sshll.u32 %s318_s7, 6  ;;  %396 = vst [vmem:[#allocation2] sm:$0xff] %v1029_v24 }
  0x2c   : > { %s380_s10 = scalar_select %p379_p11, %s1015_s17, 1 }
  0x2d   : > { %s320_s15 = scalar_lea.vmem [#allocation3], %s1162_s8  ;;  %s1323_s26 = scalar_lea.vmem [#allocation4], %s1164_s9 }
  0x2e   : > { %s917_s11 = smul.u32 384, %s380_s10  ;;  %s386_s14 = scalar_lea.vmem %s1449_s3, %s380_s10 }
  0x2f   : > { %v1170_v25 = vld [vmem:[%s386_s14] ss:$0 sm:$0xff]  ;;  %s1325_s27 = smov 0  }
  0x30   : > { %s1175_s23 = scalar_lea.vmem %s1448_s2, %s917_s11 }
  0x31   : > { %v1178_v26 = vld [vmem:[%s1175_s23] sm:$0xff]  ;;  %v1181_v27 = vld [vmem:[%s1175_s23 + $0x8] sm:$0xff]  ;;  %v1184_v28 = vld [vmem:[%s1175_s23 + $0x10] sm:$0xff] }
  0x32   : > { %v1187_v29 = vld [vmem:[%s1175_s23 + $0x18] sm:$0xff]  ;;  %v1190_v30 = vld [vmem:[%s1175_s23 + $0x20] sm:$0xff]  ;;  %v1193_v31 = vld [vmem:[%s1175_s23 + $0x28] sm:$0xff] }
  0x33   : > { %v1196_v32 = vld [vmem:[%s1175_s23 + $0x30] sm:$0xff]  ;;  %v1199_v33 = vld [vmem:[%s1175_s23 + $0x38] sm:$0xff]  ;;  %v1202_v34 = vld [vmem:[%s1175_s23 + $0x40] sm:$0xff] }
  0x34   : > { %v1205_v35 = vld [vmem:[%s1175_s23 + $0x48] sm:$0xff]  ;;  %v1208_v36 = vld [vmem:[%s1175_s23 + $0x50] sm:$0xff]  ;;  %v1211_v37 = vld [vmem:[%s1175_s23 + $0x58] sm:$0xff] }
  0x35   : > { %v1214_v38 = vld [vmem:[%s1175_s23 + $0x60] sm:$0xff]  ;;  %v1217_v39 = vld [vmem:[%s1175_s23 + $0x68] sm:$0xff]  ;;  %v1220_v40 = vld [vmem:[%s1175_s23 + $0x70] sm:$0xff] }
  0x36   : > { %v1223_v41 = vld [vmem:[%s1175_s23 + $0x78] sm:$0xff]  ;;  %v1226_v42 = vld [vmem:[%s1175_s23 + $0x80] sm:$0xff]  ;;  %v1229_v43 = vld [vmem:[%s1175_s23 + $0x88] sm:$0xff] }
  0x37   : > { %v1232_v44 = vld [vmem:[%s1175_s23 + $0x90] sm:$0xff]  ;;  %v1235_v45 = vld [vmem:[%s1175_s23 + $0x98] sm:$0xff]  ;;  %v1238_v46 = vld [vmem:[%s1175_s23 + $0xa0] sm:$0xff] }
  0x38   : > { %v1241_v47 = vld [vmem:[%s1175_s23 + $0xa8] sm:$0xff]  ;;  %v1244_v48 = vld [vmem:[%s1175_s23 + $0xb0] sm:$0xff]  ;;  %v1247_v49 = vld [vmem:[%s1175_s23 + $0xb8] sm:$0xff] }
  0x39   : > { %v1250_v50 = vld [vmem:[%s1175_s23 + $0xc0] sm:$0xff]  ;;  %v1253_v51 = vld [vmem:[%s1175_s23 + $0xc8] sm:$0xff]  ;;  %v1256_v52 = vld [vmem:[%s1175_s23 + $0xd0] sm:$0xff] }
  0x3a   : > { %v1259_v53 = vld [vmem:[%s1175_s23 + $0xd8] sm:$0xff]  ;;  %v1262_v54 = vld [vmem:[%s1175_s23 + $0xe0] sm:$0xff]  ;;  %v1265_v55 = vld [vmem:[%s1175_s23 + $0xe8] sm:$0xff] }
  0x3b   : > { %v1268_v56 = vld [vmem:[%s1175_s23 + $0xf0] sm:$0xff]  ;;  %v1271_v57 = vld [vmem:[%s1175_s23 + $0xf8] sm:$0xff]  ;;  %v1274_v58 = vld [vmem:[%s1175_s23 + $0x100] sm:$0xff] }
  0x3c   : > { %v1277_v59 = vld [vmem:[%s1175_s23 + $0x108] sm:$0xff]  ;;  %v1280_v60 = vld [vmem:[%s1175_s23 + $0x110] sm:$0xff]  ;;  %v1283_v61 = vld [vmem:[%s1175_s23 + $0x118] sm:$0xff] }
  0x3d   : > { %v1286_v62 = vld [vmem:[%s1175_s23 + $0x120] sm:$0xff]  ;;  %v1289_v63 = vld [vmem:[%s1175_s23 + $0x128] sm:$0xff]  ;;  %v1292_v0 = vld [vmem:[%s1175_s23 + $0x130] sm:$0xff] }
  0x3e   : > { %1452 = vst [vmem:[#allocation5_spill] sm:$0xff] %v1292_v0  ;;  %v1295_v1 = vld [vmem:[%s1175_s23 + $0x138] sm:$0xff]  ;;  %v1298_v2 = vld [vmem:[%s1175_s23 + $0x140] sm:$0xff]  ;;  %v1301_v3 = vld [vmem:[%s1175_s23 + $0x148] sm:$0xff] }
  0x3f   : > { %1453 = vst [vmem:[#allocation6_spill] sm:$0xff] %v1295_v1  ;;  %1454 = vst [vmem:[#allocation7_spill] sm:$0xff] %v1298_v2  ;;  %v1304_v4 = vld [vmem:[%s1175_s23 + $0x150] sm:$0xff]  ;;  %v1307_v5 = vld [vmem:[%s1175_s23 + $0x158] sm:$0xff] }
  0x40   : > { %v1310_v6 = vld [vmem:[%s1175_s23 + $0x160] sm:$0xff]  ;;  %v1313_v7 = vld [vmem:[%s1175_s23 + $0x168] sm:$0xff]  ;;  %v1316_v8 = vld [vmem:[%s1175_s23 + $0x170] sm:$0xff] }
  0x41   : > { %v1319_v9 = vld [vmem:[%s1175_s23 + $0x178] sm:$0xff] }
  0x42 LB: >> { %472 = vmatprep.subr.mxu0 %v1316_v8  ;;  %v1030_v10 = vmov 0.0   ;;  %s852_s28 = sshll.u32 %s1027_s27, 1  ;;  %v471_v11 = vld [vmem:[#allocation2] sm:$0xff]  ;;  %vm1031_vm0 = vmmov 0   ;;  %v1032_v13 = vmov 0   ;;  %s1027_s27 = sphi %s1325_s27, %s457_s27  }
  0x43   : >> { %473 = vmatpush1.msra.mxu0 %v1313_v7  ;;  %880 = vmatprep.subr.mxu1 %v1030_v10  ;;  %s459_s29 = ssub.s32 7, %s852_s28 }
  0x44   : >> { %474 = vmatprep.subr.mxu0 %v1307_v5  ;;  %536 = vmatprep.mubr.f32.mxu0 %v1030_v10  ;;  %s460_s30 = smul.u32 %s1015_s17, %s459_s29 }
  0x45   : >> { %475 = vmatpush1.msra.mxu0 %v1304_v4  ;;  %881 = vmatpush3.msra.mxu1 %v1319_v9  ;;  %v1457_v0 = vld [vmem:[#allocation5_spill] sm:$0xff] }
  0x46   : >> { %v1455_v2 = vld [vmem:[#allocation7_spill] sm:$0xff]  ;;  %882 = vmatprep.subr.mxu1 %v1030_v10  ;;  %v1456_v1 = vld [vmem:[#allocation6_spill] sm:$0xff]  ;;  %s1380_s5 = sadd.s32 %s1027_s27, %s460_s30  ;;  %912 = vmatprep.mubr.msk.f32.mxu1 %vm1031_vm0, %v1030_v10  ;;  %s457_s27 = sadd.s32 1, %s1027_s27  }
  0x47   : >> { %476 = vmatprep.subr.mxu0 %v1455_v2  ;;  %883 = vmatpush3.msra.mxu1 %v1310_v6  ;;  %s854_s6 = sshll.u32 %s1380_s5, 3  ;;  %s862_s11 = smul.u32 24, %s1380_s5 }
  0x48   : >> { %477 = vmatpush1.msra.mxu0 %v1456_v1  ;;  %884 = vmatprep.subr.mxu1 %v1030_v10  ;;  %s469_s10 = scalar_lea.vmem %s1447_s1, %s854_s6  ;;  %s644_s13 = scalar_lea.vmem %s1323_s26, %s854_s6 [#allocation4] }
  0x49   : >> { %478 = vmatprep.subr.mxu0 %v1289_v63  ;;  %885 = vmatpush3.msra.mxu1 %v1301_v3  ;;  %v470_v12 = vld [vmem:[%s469_s10] sm:$0xff]  ;;  %s464_s12 = scalar_lea.vmem %s320_s15, %s862_s11 [#allocation3]  ;;  %p454_p12 = scmp.ge.s32.totalorder %s457_s27, 8  }
  0x4a   : >> { %479 = vmatpush1.msra.mxu0 %v1286_v62  ;;  %886 = vmatprep.subr.mxu1 %v1030_v10  ;;  %v465_v14 = vld [vmem:[%s464_s12] sm:$0xff]  ;;  %v466_v20 = vld [vmem:[%s464_s12 + $0x8] sm:$0xff]  ;;  %v467_v1 = vld [vmem:[%s464_s12 + $0x10] sm:$0xff] }
  0x4b   : >> { %480 = vmatprep.subr.mxu0 %v1280_v60  ;;  %887 = vmatpush3.msra.mxu1 %v1457_v0 }
  0x4c   : >> { %481 = vmatpush1.msra.mxu0 %v1277_v59  ;;  %888 = vmatprep.subr.mxu1 %v1030_v10 }
  0x4d   : >> { %482 = vmatprep.subr.mxu0 %v1271_v57  ;;  %889 = vmatpush3.msra.mxu1 %v1283_v61 }
  0x4e   : >> { %483 = vmatpush1.msra.mxu0 %v1268_v56  ;;  %890 = vmatprep.subr.mxu1 %v1030_v10 }
  0x4f   : >> { %484 = vmatprep.subr.mxu0 %v1262_v54  ;;  %891 = vmatpush3.msra.mxu1 %v1274_v58 }
  0x50   : >> { %485 = vmatpush1.msra.mxu0 %v1259_v53  ;;  %892 = vmatprep.subr.mxu1 %v1030_v10 }
  0x51   : >> { %486 = vmatprep.subr.mxu0 %v1253_v51  ;;  %893 = vmatpush3.msra.mxu1 %v1265_v55 }
  0x52   : >> { %487 = vmatpush1.msra.mxu0 %v1250_v50  ;;  %894 = vmatprep.subr.mxu1 %v1030_v10 }
  0x53   : >> { %488 = vmatprep.subr.mxu0 %v1244_v48  ;;  %895 = vmatpush3.msra.mxu1 %v1256_v52 }
  0x54   : >> { %489 = vmatpush1.msra.mxu0 %v1241_v47  ;;  %896 = vmatprep.subr.mxu1 %v1030_v10 }
  0x55   : >> { %490 = vmatprep.subr.mxu0 %v1235_v45  ;;  %897 = vmatpush3.msra.mxu1 %v1247_v49 }
  0x56   : >> { %491 = vmatpush1.msra.mxu0 %v1232_v44  ;;  %898 = vmatprep.subr.mxu1 %v1030_v10 }
  0x57   : >> { %492 = vmatprep.subr.mxu0 %v1226_v42  ;;  %899 = vmatpush3.msra.mxu1 %v1238_v46 }
  0x58   : >> { %493 = vmatpush1.msra.mxu0 %v1223_v41  ;;  %900 = vmatprep.subr.mxu1 %v1030_v10 }
  0x59   : >> { %494 = vmatprep.subr.mxu0 %v1217_v39  ;;  %901 = vmatpush3.msra.mxu1 %v1229_v43 }
  0x5a   : >> { %495 = vmatpush1.msra.mxu0 %v1214_v38  ;;  %902 = vmatprep.subr.mxu1 %v1030_v10 }
  0x5b   : >> { %496 = vmatprep.subr.mxu0 %v1208_v36  ;;  %903 = vmatpush3.msra.mxu1 %v1220_v40 }
  0x5c   : >> { %497 = vmatpush1.msra.mxu0 %v1205_v35  ;;  %904 = vmatprep.subr.mxu1 %v1030_v10 }
  0x5d   : >> { %498 = vmatprep.subr.mxu0 %v1199_v33  ;;  %905 = vmatpush3.msra.mxu1 %v1211_v37 }
  0x5e   : >> { %499 = vmatpush1.msra.mxu0 %v1196_v32  ;;  %906 = vmatprep.subr.mxu1 %v1030_v10 }
  0x5f   : >> { %500 = vmatprep.subr.mxu0 %v1190_v30  ;;  %907 = vmatpush3.msra.mxu1 %v1202_v34 }
  0x60   : >> { %501 = vmatpush1.msra.mxu0 %v1187_v29  ;;  %908 = vmatprep.subr.mxu1 %v1030_v10 }
  0x61   : >> { %502 = vmatprep.subr.mxu0 %v1181_v27  ;;  %909 = vmatpush3.msra.mxu1 %v1193_v31 }
  0x62   : >> { %503 = vmatpush1.msra.mxu0 %v1178_v26  ;;  %910 = vmatprep.subr.mxu1 %v1030_v10 }
  0x63   : >> { %537 = vmatmul.mubr.f32.vlgmr.msra.gmra.mxu0 %v471_v11  ;;  %911 = vmatpush3.msra.mxu1 %v1184_v28 }
  0x64   : >> { %913 = vmatmul.mubr.f32.vlgmr.msra.gmra.mxu1 %v471_v11  ;;  %970 = vset.pattern.permute.xlu0 %v1032_v13 }
  0x65   : >> { %637 = vperm.xlu0 %970, %v470_v12  }
 0x123   : >> { %v538_v15 = vpop.f32.mrf.mxu0 }
 0x124   : >> { %v613_v16 = vadd.f32 %v538_v15, %v465_v14  ;;  %v609_v17 = vpop.f32.mrf.mxu1 }
 0x125   : >> { %v540_v21 = vpop.f32.mrf.mxu0  ;;  %v627_v12 = vadd.f32 %v1170_v25, %v609_v17 }
 0x126   : >> { %v855_v18 = vmul.f32 -1.442695, %v613_v16  ;;  %v914_v19 = vpop.f32.mrf.mxu1  ;;  %v620_v22 = vadd.f32 %v540_v21, %v466_v20 }
 0x128   : >> { %971 = vpow2.f32 %v855_v18  ;;  %v856_v23 = vmul.f32 -1.442695, %v620_v22 }
 0x12a   : >> { %973 = vpow2.f32 %v856_v23 }
 0x135   : >> { %v972_v24 = vpop.eup %971 }
 0x136   : >> { %v617_v10 = vadd.f32 1.0, %v972_v24  ;;  %v638_v24 = vpop.permute.xlu0 %637 }
 0x137   : >> { %v974_v13 = vpop.eup %973 }
 0x138   : >> { %975 = vrcp.f32 %v617_v10  ;;  %v624_v15 = vadd.f32 1.0, %v974_v13 }
 0x145   : >> { %v976_v0 = vpop.eup %975 }
 0x146   : >> { %v628_v14 = vmul.f32 %v976_v0, %v627_v12 }
 0x148   : >> { %v629_v16 = vadd.f32 %v628_v14, %v467_v1 }
 0x14a   : >> { %977 = vtanh.f32 %v629_v16 }
 0x14b   : >> { %979 = vrcp.f32 %v624_v15 }
 0x157   : >> { %v978_v18 = vpop.eup %977 }
 0x158   : >> { %v631_v19 = vsub.f32 %v471_v11, %v978_v18  ;;  %v980_v20 = vpop.eup %979 }
 0x15a   : >> { %v632_v21 = vmul.f32 %v980_v20, %v631_v19 }
 0x15c   : >> { %v633_v22 = vadd.f32 %v978_v18, %v632_v21 }
 0x15e   : >> { %v634_v23 = vsub.f32 %v633_v22, %v471_v11 }
 0x160   : >> { %v640_v10 = vmul.f32 %v638_v24, %v634_v23 }
 0x162   : >> { %v641_v2 = vadd.f32 %v640_v10, %v471_v11  ;;  %456 = sbr.rel (!%p454_p12) target bundleno = 66 (0x42), region = 155 }
 0x164   : >> { %642 = vst [vmem:[#allocation2] sm:$0xff] %v641_v2  ;;  %v643_v17 = vmul.f32 %v641_v2, %v638_v24 }
 0x166   : >> { %645 = vst [vmem:[%s644_s13] sm:$0xff] %v643_v17 }
 0x167   : > { %652 = sbr.rel (!%p1093_p6) target bundleno = 371 (0x173), region = 74  ;;  %s858_s14 = sshll.u32 (%p1093_p6), %s1015_s17, 3 }
 0x168   : > { %s661_s23 = scalar_lea.vmem (%p1093_p6), %s1450_s4, %s858_s14 }
 0x16d   : > { %v704_v0 = vld [vmem:[%s1323_s26] sm:$0xff]  ;;  %v706_v1 = vld [vmem:[%s1323_s26 + $0x8] sm:$0xff]  ;;  %v708_v2 = vld [vmem:[%s1323_s26 + $0x10] sm:$0xff] }
 0x16e   : > { %v710_v25 = vld [vmem:[%s1323_s26 + $0x18] sm:$0xff]  ;;  %v712_v26 = vld [vmem:[%s1323_s26 + $0x20] sm:$0xff]  ;;  %v714_v27 = vld [vmem:[%s1323_s26 + $0x28] sm:$0xff]  ;;  %705 = vst [vmem:[%s661_s23] sm:$0xff] %v704_v0 }
 0x16f   : > { %707 = vst [vmem:[%s661_s23 + $0x10] sm:$0xff] %v706_v1  ;;  %709 = vst [vmem:[%s661_s23 + $0x20] sm:$0xff] %v708_v2  ;;  %v716_v28 = vld [vmem:[%s1323_s26 + $0x30] sm:$0xff]  ;;  %v718_v29 = vld [vmem:[%s1323_s26 + $0x38] sm:$0xff] }
 0x170   : > { %711 = vst [vmem:[%s661_s23 + $0x30] sm:$0xff] %v710_v25  ;;  %713 = vst [vmem:[%s661_s23 + $0x40] sm:$0xff] %v712_v26 }
 0x171   : > { %715 = vst [vmem:[%s661_s23 + $0x50] sm:$0xff] %v714_v27  ;;  %717 = vst [vmem:[%s661_s23 + $0x60] sm:$0xff] %v716_v28 }
 0x172   : > { %719 = vst [vmem:[%s661_s23 + $0x70] sm:$0xff] %v718_v29 }
 0x173 PF: > { %s14_s19 = sadd.s32 1, %s1023_s19   ;;  %s1458_s15 = smov %s1011_s16 }
 0x174   : > { %p11_p13 = scmp.ge.s32.totalorder %s14_s19, 4   ;;  %s1459_s16 = smov %s1098_s25 }
 0x175   : > { %s1460_s17 = smov %s1019_s18  ;;  %s1461_s18 = smov %s1463_s20 }
 0x176   :  { %13 = sbr.rel (!%p11_p13) target bundleno = 3 (0x3), region = 166 }

</bundles_post_ra>
